<compile_context>
chip_gen: v7x
topology: tpu7x:2x2x1
jax: 0.10.0
libtpu: 0.0.40
codegen_flags: <defaults>
</compile_context>

<pallas_src>
import jax
import jax.numpy as jnp
from jax.experimental import pallas as pl
from jax.experimental.pallas import tpu as pltpu


EMB_SPECS = [(3, 3), (2, 2), (7, 4), (4, 3), (3, 3)]   # (num_embeddings, dim)
N_CAT = 19            # sum of vocab sizes (one-hot width)
H1, H2, OUT = 256, 32, 2


# ---------------------------------------------------------------------------
# Pallas kernel: fused (folded-emb + raw)->256->ReLU->32->ReLU->2 MLP
# ---------------------------------------------------------------------------
def mlp_kernel(x_ref, tcat_ref, wraw_ref, b1_ref, w2_ref, b2_ref, w3_ref, b3_ref,
               o_ref):
    xi = x_ref[...]                                    # (TB, 9) int32
    tb = xi.shape[0]

    # Categorical one-hot (TB, 19), built without gathers/concats.
    # lane segments: [0:3)->col0, [3:5)->col1, [5:12)->col4, [12:16)->col7,
    # [16:19)->col8 ; row r, lane j is hot iff x[r, col(seg(j))] == j - base(j)
    lane = jax.lax.broadcasted_iota(jnp.int32, (tb, N_CAT), 1)
    x0 = xi[:, 0:1]; x1 = xi[:, 1:2]; x4 = xi[:, 4:5]
    x7 = xi[:, 7:8]; x8 = xi[:, 8:9]
    tgt = jnp.where(lane < 3, x0,
          jnp.where(lane < 5, x1 + 3,
          jnp.where(lane < 12, x4 + 5,
          jnp.where(lane < 16, x7 + 12, x8 + 16))))
    onehot = (lane == tgt).astype(jnp.bfloat16)        # exact in bf16

    # Layer 1: folded embedding tables (bf16 MXU) + raw columns (f32, exact).
    h = jnp.dot(onehot, tcat_ref[...], preferred_element_type=jnp.float32)
    h += jnp.dot(xi.astype(jnp.float32), wraw_ref[...],
                 preferred_element_type=jnp.float32)
    h = jnp.maximum(h + b1_ref[...], 0.0)              # (TB, 256) f32

    # Layer 2
    h = jnp.dot(h.astype(jnp.bfloat16), w2_ref[...],
                preferred_element_type=jnp.float32)
    h = jnp.maximum(h + b2_ref[...], 0.0)              # (TB, 32) f32

    # Output layer
    o = jnp.dot(h.astype(jnp.bfloat16), w3_ref[...],
                preferred_element_type=jnp.float32)
    o_ref[...] = o + b3_ref[...]                       # (TB, 2) f32


# ---------------------------------------------------------------------------
# Wrapper: fold embeddings into layer 1, batch-tiled pallas_call
# ---------------------------------------------------------------------------
def _round_up(a, m):
    return ((a + m - 1) // m) * m


def fold_params(params):
    """Precompute kernel-side weights (embeddings folded into layer 1)."""
    w1 = params["w1"]                          # (19, 256) f32
    emb = params["emb"]
    dims = [d for _, d in EMB_SPECS]           # 3,2,4,3,3 -> w1 row spans
    offs = [0, 3, 5, 9, 12]
    tcat = jnp.concatenate(
        [emb[k] @ w1[offs[k]:offs[k] + dims[k], :] for k in range(5)], axis=0)
    # raw x columns 2,3,5,6 map to w1 rows 15..18; other x columns hit zeros.
    wraw = jnp.zeros((9, H1), jnp.float32)
    wraw = wraw.at[2:4].set(w1[15:17]).at[5:7].set(w1[17:19])
    return dict(
        tcat=tcat.astype(jnp.bfloat16),        # (19, 256)
        wraw=wraw,                             # (9, 256) f32
        b1=params["b1"],                       # (1, 256) f32
        w2=params["w2"].astype(jnp.bfloat16),  # (256, 32)
        b2=params["b2"],                       # (1, 32) f32
        w3=params["w3"].astype(jnp.bfloat16),  # (32, 2)
        b3=params["b3"],                       # (1, 2) f32
    )


def dnn_forward(x, folded, *, tb=512):
    """x: (B, 9) integer-valued features (any float/int dtype)."""
    xi = x.astype(jnp.int32)                   # matches torch .long() truncation
    B = xi.shape[0]
    TB = min(tb, _round_up(max(B, 1), 8))      # multiple of 8 (f32 sublanes)
    Bp = _round_up(B, TB)
    if Bp != B:
        xi = jnp.pad(xi, ((0, Bp - B), (0, 0)))  # pad rows: index 0 is valid

    row_spec = pl.BlockSpec((TB, 9), lambda i: (i, 0))
    out_spec = pl.BlockSpec((TB, OUT), lambda i: (i, 0))

    def resident(shape):                       # weights stay VMEM-resident
        return pl.BlockSpec(shape, lambda i: (0, 0))

    out = pl.pallas_call(
        mlp_kernel,
        out_shape=jax.ShapeDtypeStruct((Bp, OUT), jnp.float32),
        grid=(Bp // TB,),
        in_specs=[
            row_spec,
            resident((N_CAT, H1)),   # tcat
            resident((9, H1)),       # wraw
            resident((1, H1)),       # b1
            resident((H1, H2)),      # w2
            resident((1, H2)),       # b2
            resident((H2, OUT)),     # w3
            resident((1, OUT)),      # b3
        ],
        out_specs=out_spec,
        compiler_params=pltpu.CompilerParams(
            dimension_semantics=("parallel",)),
    )(xi, folded["tcat"], folded["wraw"], folded["b1"],
      folded["w2"], folded["b2"], folded["w3"], folded["b3"])
    return out[:B]


# ---------------------------------------------------------------------------
# Deterministic parameters (PyTorch-default-style init) + pure-JAX reference
# ---------------------------------------------------------------------------
def init_params(key):
    keys = jax.random.split(key, 16)
    ki = iter(keys)
    params = {}
    params["emb"] = [
        jax.random.normal(next(ki), (n, d), dtype=jnp.float32) for n, d in EMB_SPECS
    ]

    def linear(kw, kb, din, dout):
        s = 1.0 / jnp.sqrt(jnp.float32(din))
        w = jax.random.uniform(kw, (din, dout), jnp.float32, -s, s)
        b = jax.random.uniform(kb, (1, dout), jnp.float32, -s, s)
        return w, b

    params["w1"], params["b1"] = linear(next(ki), next(ki), 19, H1)
    params["w2"], params["b2"] = linear(next(ki), next(ki), H1, H2)
    params["w3"], params["b3"] = linear(next(ki), next(ki), H2, OUT)
    return params


def reference_forward(x, params):
    """Pure-JAX f32 replica of the PyTorch forward."""
    xi = x.astype(jnp.int32)
    emb = params["emb"]
    e = [jnp.take(emb[0], xi[:, 0], axis=0),
         jnp.take(emb[1], xi[:, 1], axis=0),
         jnp.take(emb[2], xi[:, 4], axis=0),
         jnp.take(emb[3], xi[:, 7], axis=0),
         jnp.take(emb[4], xi[:, 8], axis=0)]
    raw_a = xi[:, 2:4].astype(jnp.float32)
    raw_b = xi[:, 5:7].astype(jnp.float32)
    feats = jnp.concatenate(e + [raw_a, raw_b], axis=1)        # (B, 19)
    h = jnp.maximum(feats @ params["w1"] + params["b1"], 0.0)
    h = jnp.maximum(h @ params["w2"] + params["b2"], 0.0)
    return h @ params["w3"] + params["b3"]


def make_x(key, B):
    ks = jax.random.split(key, 9)
    cols = [
        jax.random.randint(ks[0], (B,), 0, 3),   # col 0 -> emb0 (vocab 3)
        jax.random.randint(ks[1], (B,), 0, 2),   # col 1 -> emb1 (vocab 2)
        jax.random.randint(ks[2], (B,), 0, 5),   # col 2 -> raw numeric
        jax.random.randint(ks[3], (B,), 0, 5),   # col 3 -> raw numeric
        jax.random.randint(ks[4], (B,), 0, 7),   # col 4 -> emb2 (vocab 7)
        jax.random.randint(ks[5], (B,), 0, 5),   # col 5 -> raw numeric
        jax.random.randint(ks[6], (B,), 0, 5),   # col 6 -> raw numeric
        jax.random.randint(ks[7], (B,), 0, 4),   # col 7 -> emb3 (vocab 4)
        jax.random.randint(ks[8], (B,), 0, 3),   # col 8 -> emb4 (vocab 3)
    ]
    return jnp.stack(cols, axis=1).astype(jnp.float32)


# ---------------------------------------------------------------------------
if __name__ == "__main__":
    key = jax.random.PRNGKey(0)
    pkey, xkey1, xkey2 = jax.random.split(key, 3)
    params = init_params(pkey)
    folded = fold_params(params)

    # Small demo batch (single grid step).
    B = 8
    x = make_x(xkey1, B)                               # (8, 9)
    out = dnn_forward(x, folded)
    out = jax.block_until_ready(out)
    ref = reference_forward(x, params)
    assert out.shape == (B, 2)
    assert jnp.allclose(out, ref, atol=2e-2, rtol=2e-2)

    # Larger, non-divisible batch: exercises multi-step grid + padding path.
    B2 = 200
    x2 = make_x(xkey2, B2)
    out2 = jax.block_until_ready(dnn_forward(x2, folded, tb=64))   # grid = 4
    ref2 = reference_forward(x2, params)
    assert out2.shape == (B2, 2)
    assert jnp.allclose(out2, ref2, atol=2e-2, rtol=2e-2)

    print("KERNEL_OK")
</pallas_src>

<mosaic_0001>
module attributes {stable_mosaic.version = 11 : i64} {
  func.func @mlp_kernel(%arg0: i32, %arg1: memref<8x9xi32, #tpu.memory_space<vmem>>, %arg2: memref<19x256xbf16, #tpu.memory_space<vmem>>, %arg3: memref<9x256xf32, #tpu.memory_space<vmem>>, %arg4: memref<1x256xf32, #tpu.memory_space<vmem>>, %arg5: memref<256x32xbf16, #tpu.memory_space<vmem>>, %arg6: memref<1x32xf32, #tpu.memory_space<vmem>>, %arg7: memref<32x2xbf16, #tpu.memory_space<vmem>>, %arg8: memref<1x2xf32, #tpu.memory_space<vmem>>, %arg9: memref<8x2xf32, #tpu.memory_space<vmem>>) attributes {dimension_semantics = [#tpu.dimension_semantics<parallel>], iteration_bounds = array<i64: 1>, scalar_prefetch = 0 : i64, scratch_operands = 0 : i64, tpu.core_type = #tpu.core_type<tc>, window_params = [{transform_indices = @transform_0, window_bounds = array<i64: 8, 9>}, {pipeline_mode = #tpu.pipeline_mode<synchronous>, transform_indices = @transform_1, window_bounds = array<i64: 19, 256>}, {pipeline_mode = #tpu.pipeline_mode<synchronous>, transform_indices = @transform_2, window_bounds = array<i64: 9, 256>}, {pipeline_mode = #tpu.pipeline_mode<synchronous>, transform_indices = @transform_3, window_bounds = array<i64: 1, 256>}, {pipeline_mode = #tpu.pipeline_mode<synchronous>, transform_indices = @transform_4, window_bounds = array<i64: 256, 32>}, {pipeline_mode = #tpu.pipeline_mode<synchronous>, transform_indices = @transform_5, window_bounds = array<i64: 1, 32>}, {pipeline_mode = #tpu.pipeline_mode<synchronous>, transform_indices = @transform_6, window_bounds = array<i64: 32, 2>}, {pipeline_mode = #tpu.pipeline_mode<synchronous>, transform_indices = @transform_7, window_bounds = array<i64: 1, 2>}, {transform_indices = @transform_8, window_bounds = array<i64: 8, 2>}]} {
    %c0 = arith.constant 0 : index
    %c0_0 = arith.constant 0 : index
    %0 = vector.load %arg1[%c0, %c0_0] : memref<8x9xi32, #tpu.memory_space<vmem>>, vector<8x9xi32>
    %1 = tpu.iota {dimensions = array<i32: 1>} : vector<8x19xi32>
    %2 = vector.extract_strided_slice %0 {offsets = [0, 0], sizes = [8, 1], strides = [1, 1]} : vector<8x9xi32> to vector<8x1xi32>
    %3 = vector.extract_strided_slice %0 {offsets = [0, 1], sizes = [8, 1], strides = [1, 1]} : vector<8x9xi32> to vector<8x1xi32>
    %4 = vector.extract_strided_slice %0 {offsets = [0, 4], sizes = [8, 1], strides = [1, 1]} : vector<8x9xi32> to vector<8x1xi32>
    %5 = vector.extract_strided_slice %0 {offsets = [0, 7], sizes = [8, 1], strides = [1, 1]} : vector<8x9xi32> to vector<8x1xi32>
    %6 = vector.extract_strided_slice %0 {offsets = [0, 8], sizes = [8, 1], strides = [1, 1]} : vector<8x9xi32> to vector<8x1xi32>
    %c3_i32 = arith.constant 3 : i32
    %7 = vector.broadcast %c3_i32 : i32 to vector<8x19xi32>
    %8 = arith.cmpi slt, %1, %7 : vector<8x19xi32>
    %c5_i32 = arith.constant 5 : i32
    %9 = vector.broadcast %c5_i32 : i32 to vector<8x19xi32>
    %10 = arith.cmpi slt, %1, %9 : vector<8x19xi32>
    %c3_i32_1 = arith.constant 3 : i32
    %11 = vector.broadcast %c3_i32_1 : i32 to vector<8x1xi32>
    %12 = arith.addi %3, %11 : vector<8x1xi32>
    %c12_i32 = arith.constant 12 : i32
    %13 = vector.broadcast %c12_i32 : i32 to vector<8x19xi32>
    %14 = arith.cmpi slt, %1, %13 : vector<8x19xi32>
    %c5_i32_2 = arith.constant 5 : i32
    %15 = vector.broadcast %c5_i32_2 : i32 to vector<8x1xi32>
    %16 = arith.addi %4, %15 : vector<8x1xi32>
    %c16_i32 = arith.constant 16 : i32
    %17 = vector.broadcast %c16_i32 : i32 to vector<8x19xi32>
    %18 = arith.cmpi slt, %1, %17 : vector<8x19xi32>
    %c12_i32_3 = arith.constant 12 : i32
    %19 = vector.broadcast %c12_i32_3 : i32 to vector<8x1xi32>
    %20 = arith.addi %5, %19 : vector<8x1xi32>
    %c16_i32_4 = arith.constant 16 : i32
    %21 = vector.broadcast %c16_i32_4 : i32 to vector<8x1xi32>
    %22 = arith.addi %6, %21 : vector<8x1xi32>
    %23 = vector.shape_cast %20 : vector<8x1xi32> to vector<8x1xi32>
    %24 = vector.broadcast %23 : vector<8x1xi32> to vector<8x19xi32>
    %25 = vector.shape_cast %22 : vector<8x1xi32> to vector<8x1xi32>
    %26 = vector.broadcast %25 : vector<8x1xi32> to vector<8x19xi32>
    %27 = arith.select %18, %24, %26 : vector<8x19xi1>, vector<8x19xi32>
    %28 = vector.shape_cast %16 : vector<8x1xi32> to vector<8x1xi32>
    %29 = vector.broadcast %28 : vector<8x1xi32> to vector<8x19xi32>
    %30 = arith.select %14, %29, %27 : vector<8x19xi1>, vector<8x19xi32>
    %31 = vector.shape_cast %12 : vector<8x1xi32> to vector<8x1xi32>
    %32 = vector.broadcast %31 : vector<8x1xi32> to vector<8x19xi32>
    %33 = arith.select %10, %32, %30 : vector<8x19xi1>, vector<8x19xi32>
    %34 = vector.shape_cast %2 : vector<8x1xi32> to vector<8x1xi32>
    %35 = vector.broadcast %34 : vector<8x1xi32> to vector<8x19xi32>
    %36 = arith.select %8, %35, %33 : vector<8x19xi1>, vector<8x19xi32>
    %37 = arith.cmpi eq, %1, %36 : vector<8x19xi32>
    %38 = arith.extui %37 : vector<8x19xi1> to vector<8x19xi32>
    %39 = arith.sitofp %38 : vector<8x19xi32> to vector<8x19xf32>
    %40 = arith.truncf %39 : vector<8x19xf32> to vector<8x19xbf16>
    %c0_5 = arith.constant 0 : index
    %c0_6 = arith.constant 0 : index
    %41 = vector.load %arg2[%c0_5, %c0_6] : memref<19x256xbf16, #tpu.memory_space<vmem>>, vector<19x256xbf16>
    %cst = arith.constant dense<0.000000e+00> : vector<8x256xf32>
    %42 = tpu.matmul %40, %41, %cst {dimension_numbers = #tpu.dot_dimension_numbers<[1], [0], [0], [1], [0, 0, 1, 1], [], []>} : vector<8x19xbf16>, vector<19x256xbf16>, vector<8x256xf32> -> vector<8x256xf32>
    %43 = arith.sitofp %0 : vector<8x9xi32> to vector<8x9xf32>
    %c0_7 = arith.constant 0 : index
    %c0_8 = arith.constant 0 : index
    %44 = vector.load %arg3[%c0_7, %c0_8] : memref<9x256xf32, #tpu.memory_space<vmem>>, vector<9x256xf32>
    %cst_9 = arith.constant dense<0.000000e+00> : vector<8x256xf32>
    %45 = tpu.matmul %43, %44, %cst_9 {dimension_numbers = #tpu.dot_dimension_numbers<[1], [0], [0], [1], [0, 0, 1, 1], [], []>} : vector<8x9xf32>, vector<9x256xf32>, vector<8x256xf32> -> vector<8x256xf32>
    %46 = arith.addf %42, %45 : vector<8x256xf32>
    %c0_10 = arith.constant 0 : index
    %c0_11 = arith.constant 0 : index
    %47 = vector.load %arg4[%c0_10, %c0_11] : memref<1x256xf32, #tpu.memory_space<vmem>>, vector<1x256xf32>
    %48 = vector.broadcast %47 : vector<1x256xf32> to vector<8x256xf32>
    %49 = arith.addf %46, %48 : vector<8x256xf32>
    %cst_12 = arith.constant 0.000000e+00 : f32
    %50 = vector.broadcast %cst_12 : f32 to vector<8x256xf32>
    %51 = arith.maximumf %49, %50 : vector<8x256xf32>
    %52 = arith.truncf %51 : vector<8x256xf32> to vector<8x256xbf16>
    %c0_13 = arith.constant 0 : index
    %c0_14 = arith.constant 0 : index
    %53 = vector.load %arg5[%c0_13, %c0_14] : memref<256x32xbf16, #tpu.memory_space<vmem>>, vector<256x32xbf16>
    %cst_15 = arith.constant dense<0.000000e+00> : vector<8x32xf32>
    %54 = tpu.matmul %52, %53, %cst_15 {dimension_numbers = #tpu.dot_dimension_numbers<[1], [0], [0], [1], [0, 0, 1, 1], [], []>} : vector<8x256xbf16>, vector<256x32xbf16>, vector<8x32xf32> -> vector<8x32xf32>
    %c0_16 = arith.constant 0 : index
    %c0_17 = arith.constant 0 : index
    %55 = vector.load %arg6[%c0_16, %c0_17] : memref<1x32xf32, #tpu.memory_space<vmem>>, vector<1x32xf32>
    %56 = vector.broadcast %55 : vector<1x32xf32> to vector<8x32xf32>
    %57 = arith.addf %54, %56 : vector<8x32xf32>
    %cst_18 = arith.constant 0.000000e+00 : f32
    %58 = vector.broadcast %cst_18 : f32 to vector<8x32xf32>
    %59 = arith.maximumf %57, %58 : vector<8x32xf32>
    %60 = arith.truncf %59 : vector<8x32xf32> to vector<8x32xbf16>
    %c0_19 = arith.constant 0 : index
    %c0_20 = arith.constant 0 : index
    %61 = vector.load %arg7[%c0_19, %c0_20] : memref<32x2xbf16, #tpu.memory_space<vmem>>, vector<32x2xbf16>
    %cst_21 = arith.constant dense<0.000000e+00> : vector<8x2xf32>
    %62 = tpu.matmul %60, %61, %cst_21 {dimension_numbers = #tpu.dot_dimension_numbers<[1], [0], [0], [1], [0, 0, 1, 1], [], []>} : vector<8x32xbf16>, vector<32x2xbf16>, vector<8x2xf32> -> vector<8x2xf32>
    %c0_22 = arith.constant 0 : index
    %c0_23 = arith.constant 0 : index
    %63 = vector.load %arg8[%c0_22, %c0_23] : memref<1x2xf32, #tpu.memory_space<vmem>>, vector<1x2xf32>
    %64 = vector.broadcast %63 : vector<1x2xf32> to vector<8x2xf32>
    %65 = arith.addf %62, %64 : vector<8x2xf32>
    %c0_24 = arith.constant 0 : index
    %c0_25 = arith.constant 0 : index
    %66 = vector.load %arg9[%c0_24, %c0_25] : memref<8x2xf32, #tpu.memory_space<vmem>>, vector<8x2xf32>
    tpu.vector_store %arg9[%c0_24, %c0_25], %65 {strides = array<i32>} : memref<8x2xf32, #tpu.memory_space<vmem>>, vector<8x2xf32>,
    return
  }
  func.func @transform_0(%arg0: i32) -> (i32, i32) {
    %c0_i32 = arith.constant 0 : i32
    %c0_i32_0 = arith.constant 0 : i32
    return %arg0, %c0_i32 : i32, i32
  }
  func.func @transform_1(%arg0: i32) -> (i32, i32) {
    %c0_i32 = arith.constant 0 : i32
    %c0_i32_0 = arith.constant 0 : i32
    %c0_i32_1 = arith.constant 0 : i32
    return %c0_i32, %c0_i32_0 : i32, i32
  }
  func.func @transform_2(%arg0: i32) -> (i32, i32) {
    %c0_i32 = arith.constant 0 : i32
    %c0_i32_0 = arith.constant 0 : i32
    %c0_i32_1 = arith.constant 0 : i32
    return %c0_i32, %c0_i32_0 : i32, i32
  }
  func.func @transform_3(%arg0: i32) -> (i32, i32) {
    %c0_i32 = arith.constant 0 : i32
    %c0_i32_0 = arith.constant 0 : i32
    %c0_i32_1 = arith.constant 0 : i32
    return %c0_i32, %c0_i32_0 : i32, i32
  }
  func.func @transform_4(%arg0: i32) -> (i32, i32) {
    %c0_i32 = arith.constant 0 : i32
    %c0_i32_0 = arith.constant 0 : i32
    %c0_i32_1 = arith.constant 0 : i32
    return %c0_i32, %c0_i32_0 : i32, i32
  }
  func.func @transform_5(%arg0: i32) -> (i32, i32) {
    %c0_i32 = arith.constant 0 : i32
    %c0_i32_0 = arith.constant 0 : i32
    %c0_i32_1 = arith.constant 0 : i32
    return %c0_i32, %c0_i32_0 : i32, i32
  }
  func.func @transform_6(%arg0: i32) -> (i32, i32) {
    %c0_i32 = arith.constant 0 : i32
    %c0_i32_0 = arith.constant 0 : i32
    %c0_i32_1 = arith.constant 0 : i32
    return %c0_i32, %c0_i32_0 : i32, i32
  }
  func.func @transform_7(%arg0: i32) -> (i32, i32) {
    %c0_i32 = arith.constant 0 : i32
    %c0_i32_0 = arith.constant 0 : i32
    %c0_i32_1 = arith.constant 0 : i32
    return %c0_i32, %c0_i32_0 : i32, i32
  }
  func.func @transform_8(%arg0: i32) -> (i32, i32) {
    %c0_i32 = arith.constant 0 : i32
    %c0_i32_0 = arith.constant 0 : i32
    return %arg0, %c0_i32 : i32, i32
  }
}

</mosaic_0001>

<bundles_post_ra>
// kernel: tpu_custom_call.1
= control target key start
LH: loop header
LB: loop body
LE: loop exit
PB: predicated region body
PF: predicated region fallthrough
CT: control target
= control target key end

     0   :  { %v598_v0 = vmov 4   ;;  %v599_v1 = vmov 7   ;;  %vm76_vm0 = vcmask 1040384   ;;  %vm600_vm1 = vmmov 1   ;;  %s757_s0 = inlined_call_operand.vmem [shape: s32[8,9], index: 0, kind: input, shape index: {}]   ;;  %s758_s2 = inlined_call_operand.vmem [shape: f32[9,256], index: 2, kind: input, shape index: {}]   ;;  %s759_s1 = inlined_call_operand.vmem [shape: bf16[19,256], index: 1, kind: input, shape index: {}]   ;;  %s760_s4 = inlined_call_operand.vmem [shape: bf16[256,32], index: 4, kind: input, shape index: {}]   ;;  %s761_s3 = inlined_call_operand.vmem [shape: f32[1,256], index: 3, kind: input, shape index: {}]   ;;  %s762_s6 = inlined_call_operand.vmem [shape: bf16[32,2], index: 6, kind: input, shape index: {}]   ;;  %s763_s5 = inlined_call_operand.vmem [shape: f32[1,32], index: 5, kind: input, shape index: {}]   ;;  %s764_s7 = inlined_call_operand.vmem [shape: f32[1,2], index: 7, kind: input, shape index: {}]   ;;  %s765_s8 = inlined_call_operand.vmem [shape: f32[8,2], index: 8, kind: output, shape index: {}]  }
   0x1   :  { %571 = vset.pattern.permute.xlu1 %v598_v0  ;;  %569 = vset.pattern.permute.xlu0 %v599_v1  ;;  %v30_v2 = vld [vmem:[%s757_s0] sm:$0xff]  ;;  %v69_v5 = vld [vmem:[%s758_s2 + $0x8] sm:$0xff]  ;;  %v71_v6 = vld [vmem:[%s758_s2 + $0x18] sm:$0x1]  ;;  %vm173_vm3 = vcmask 1041408   ;;  %v601_v15 = vmov 65535   ;;  %v31_v40 = vlaneseq }
   0x2   :  { %v39_v3 = vadd.s32 12, %v30_v2  ;;  %v37_v4 = vadd.s32 5, %v30_v2  ;;  %v40_v7 = vadd.s32 16, %v30_v2  ;;  %v35_v8 = vadd.s32 3, %v30_v2  ;;  %vm662_vm2 = vmpackc.low %vm76_vm0, %vm600_vm1  ;;  %v68_v11 = vld [vmem:[%s758_s2] sm:$0xff]  ;;  %v582_v31 = vld [vmem:[%s760_s4 + $0x48] sm:$0xff]  }
   0x3   :  { %v554_v9 = vpack.c.bf16 %v71_v6, %v69_v5  ;;  %v70_v12 = vld [vmem:[%s758_s2 + $0x10] sm:$0x1]  ;;  %v174_v16 = vsel %vm76_vm0, 4294967295, %v601_v15  ;;  %v602_v17 = vmov 8   ;;  %v603_v18 = vmov 1   ;;  %v580_v29 = vld [vmem:[%s760_s4 + $0x40] sm:$0xff]  }
   0x4   :  { %42 = vperm.xlu0 %569, %v39_v3   ;;  %49 = vperm.xlu1 %571, %v37_v4   ;;  %v557_v13 = vpack.c.bf16 %v70_v12, %v68_v11  ;;  %v66_v14 = vld [vmem:[%s759_s1 + $0x10] sm:$0x33]  ;;  %v67_v19 = vcvt.s32.f32 %v30_v2  ;;  %v578_v20 = vld [vmem:[%s759_s1 + $0x4] ss:$8 sps:$4 sm:$0xff]   ;;  %v175_v22 = vsel %vm173_vm3, %v174_v16, 0  ;;  %v604_v23 = vmov 0.0  }
   0x5   :  { %556 = vmatprep.subr.msk.bf16.mxu1 %vm662_vm2, %v554_v9  ;;  %v497_v21 = vcombine.low %v66_v14, %v66_v14  ;;  %147 = vmatprep.mubr.f32.mxu1 %v604_v23  ;;  %vm72_vm4 = vcmask 72704   ;;  %v576_v24 = vld [vmem:[%s759_s1] ss:$8 sps:$4 sm:$0xff]   ;;  %v498_v25 = vcombine.high %v66_v14, %v66_v14  ;;  %v605_v26 = vmov 0   ;;  %v584_v33 = vld [vmem:[%s760_s4 + $0x50] sm:$0xff]   ;;  %v586_v35 = vld [vmem:[%s760_s4 + $0x58] sm:$0xff]  }
   0x6   :  { %559 = vmatpush1.bf16.msk.msra.mxu1 %vm662_vm2, %v557_v13  ;;  %v581_v30 = vld [vmem:[%s760_s4] sm:$0xff]   ;;  %521 = vmatprep.subr.bf16.mxu0 %v580_v29  ;;  %v583_v32 = vld [vmem:[%s760_s4 + $0x8] sm:$0xff]   ;;  %v585_v34 = vld [vmem:[%s760_s4 + $0x10] sm:$0xff]   ;;  %v32_v41 = vand.u32 127, %v31_v40  ;;  %vm169_vm10 = vcmask 154624   ;;  %v226_v60 = vshrl.u32 %v31_v40, 7 }
   0x7   :  { %182 = vmatprep.subr.bf16.mxu1 %v578_v20  ;;  %v180_v27 = vand.u32 %v498_v25, %v175_v22  ;;  %v177_v28 = vand.u32 %v497_v21, %v175_v22  ;;  %522 = vmatpush3.bf16.msra.mxu0 %v581_v30  ;;  %v587_v36 = vld [vmem:[%s760_s4 + $0x18] sm:$0xff]   ;;  %v588_v37 = vld [vmem:[%s760_s4 + $0x60] sm:$0xff]   ;;  %v590_v39 = vld [vmem:[%s760_s4 + $0x68] sm:$0xff]   ;;  %vm606_vm11 = vmmov 0   ;;  %vm441_vm12 = vcmask 261120  }
   0x8   :  { %570 = vset.pattern.permute.xlu0 %v602_v17  ;;  %572 = vset.pattern.permute.xlu1 %v603_v18  ;;  %v589_v38 = vld [vmem:[%s760_s4 + $0x20] sm:$0xff]   ;;  %vm38_vm5 = vcmp.lt.s32.totalorder %v32_v41, 16  ;;  %vm36_vm6 = vcmp.lt.s32.totalorder %v32_v41, 12  ;;  %vm34_vm7 = vcmp.lt.s32.totalorder %v32_v41, 5  ;;  %vm33_vm8 = vcmp.lt.s32.totalorder %v32_v41, 3  ;;  %v591_v55 = vld [vmem:[%s760_s4 + $0x28] sm:$0xff]  }
   0x9   :  { %45 = vperm.xlu0 %570, %v40_v7   ;;  %53 = vperm.xlu1 %572, %v35_v8   ;;  %v592_v56 = vld [vmem:[%s760_s4 + $0x70] sm:$0xff]   ;;  %v594_v58 = vld [vmem:[%s760_s4 + $0x78] sm:$0xff]   ;;  %v227_v61 = vsub.s32 0, %v226_v60  ;;  %v223_v62 = vld [vmem:[%s761_s3] sm:$0x3]  ;;  %v231_v63 = vsub.s32 1, %v226_v60 }
   0xa   :  { %494 = vmatmul.mubr.msk.f32.vlgmr.msra.gmra.mrb[0].mxu1 %vm72_vm4, %v67_v19  ;;  %523 = vmatprep.subr.bf16.mxu0 %v582_v31  ;;  %v593_v57 = vld [vmem:[%s760_s4 + $0x30] sm:$0xff]   ;;  %v595_v59 = vld [vmem:[%s760_s4 + $0x38] sm:$0xff]   ;;  %v596_v14 = vld [vmem:[%s762_s6] sm:$0xff]   ;;  %vm485_vm13 = vcmask 15360  }
   0xb   :  { %183 = vmatpush1.bf16.msra.mxu1 %v576_v24  ;;  %214 = vmatprep.mubr.bf16.mxu1 %v605_v26  ;;  %v228_v0 = vrot.slane %v223_v62, %v227_v61  ;;  %v597_v15 = vld [vmem:[%s762_s6 + $0x8] sm:$0xff]   ;;  %v500_v17 = vld [vmem:[%s763_s5] ss:$0 sm:$0xff] }
   0xc   :  { %184 = vmatprep.subr.bf16.mxu1 %v180_v27  ;;  %524 = vmatpush3.bf16.msra.mxu0 %v583_v32 }
   0xd   :  { %573 = vset.pattern.permute.xlu1 %v605_v26  ;;  %574 = vset.pattern.permute.xlu0 %v605_v26  ;;  %v517_v26 = vld [vmem:[%s764_s7] ss:$0 sm:$0xff] }
   0xe   :  { %57 = vperm.xlu1 %573, %v30_v2   ;;  %525 = vmatprep.subr.bf16.mxu0 %v584_v33  ;;  %v232_v2 = vrot.slane %v223_v62, %v231_v63 }
   0xf   :  { %185 = vmatpush1.bf16.msra.mxu1 %v177_v28 }
  0x10   :  { %546 = vmatprep.subr.bf16.mxu1 %v604_v23  ;;  %526 = vmatpush3.bf16.msra.mxu0 %v585_v34 }
  0x11   :  { %527 = vmatprep.subr.bf16.mxu0 %v586_v35 }
  0x14   :  { %528 = vmatpush3.bf16.msra.mxu0 %v587_v36 }
  0x15   :  { %529 = vmatprep.subr.bf16.mxu0 %v588_v37 }
  0x18   :  { %530 = vmatpush3.bf16.msra.mxu0 %v589_v38 }
  0x19   :  { %531 = vmatprep.subr.bf16.mxu0 %v590_v39 }
  0x1c   :  { %532 = vmatpush3.bf16.msra.mxu0 %v591_v55 }
  0x1d   :  { %533 = vmatprep.subr.bf16.mxu0 %v592_v56 }
  0x20   :  { %534 = vmatpush3.bf16.msra.mxu0 %v593_v57 }
  0x21   :  { %535 = vmatprep.subr.bf16.mxu0 %v594_v58 }
  0x24   :  { %536 = vmatpush3.bf16.msra.mxu0 %v595_v59 }
  0x83   :  { %v50_v42 = vpop.permute.xlu1 %49  ;;  %v43_v43 = vpop.permute.xlu0 %42 }
  0x88   :  { %v46_v44 = vpop.permute.xlu0 %45  ;;  %v54_v45 = vpop.permute.xlu1 %53 }
  0x89   :  { %v47_v46 = vsel %vm38_vm5, %v43_v43, %v46_v44 }
  0x8a   :  { %v51_v47 = vsel %vm36_vm6, %v50_v42, %v47_v46 }
  0x8b   :  { %v55_v48 = vsel %vm34_vm7, %v54_v45, %v51_v47 }
  0x8d   :  { %v58_v49 = vpop.permute.xlu1 %57 }
  0x8e   :  { %v59_v50 = vsel %vm33_vm8, %v58_v49, %v55_v48 }
  0x8f   :  { %vm60_vm9 = vcmp.eq.s32.totalorder %v32_v41, %v59_v50 }
  0x90   :  { %v491_v51 = vsel %vm60_vm9, 1.0, %v604_v23 }
  0x91   :  { %v63_v52 = vpack.c.bf16 %v491_v51, %v491_v51 }
  0x93   :  { %499 = vmatmul.mubr.msk.bf16.vlgmr.msra.gmra.mrb[4].mxu1 %vm169_vm10, %v63_v52 }
  0x94   :  { %547 = vmatpush3.bf16.msra.mxu1 %v596_v14  ;;  %550 = vmatprep.mubr.msk.bf16.mxu1 %vm606_vm11, %v604_v23 }
  0x95   :  { %548 = vmatprep.subr.bf16.mxu1 %v604_v23 }
  0x98   :  { %549 = vmatpush3.bf16.msra.mxu1 %v597_v15 }
  0xdd   :  { %v149_v53 = vpop.f32.mrb[0].mxu1 }
  0xde   :  { %v151_v54 = vpop.f32.mrb[1].mxu1 }
 0x166   :  { %v216_v1 = vpop.f32.mrb[4].mxu1 }
 0x167   :  { %v217_v3 = vadd.f32 %v216_v1, %v149_v53  ;;  %v218_v4 = vpop.f32.mrb[5].mxu1 }
 0x168   :  { %v219_v5 = vadd.f32 %v218_v4, %v151_v54  ;;  %v220_v6 = vpop.f32.mrb[6].mxu1 }
 0x169   :  { %v235_v7 = vadd.f32 %v228_v0, %v217_v3  ;;  %v221_v8 = vpop.f32.mrb[7].mxu1 }
 0x16a   :  { %v236_v9 = vadd.f32 %v232_v2, %v219_v5 }
 0x16b   :  { %v237_v10 = vmax.f32 %v235_v7, 0.0 }
 0x16c   :  { %v238_v11 = vmax.f32 %v236_v9, 0.0 }
 0x16d   :  { %v239_v13 = vpack.c.bf16 %v237_v10, %v237_v10 }
 0x16e   :  { %v240_v12 = vpack.c.bf16 %v238_v11, %v238_v11 }
 0x170   :  { %408 = vmatprep.mubr.bf16.mxu0 %v240_v12 }
 0x171   :  { %409 = vmatmul.mubr.bf16.vlgmr.msra.gmra.mrb[0].mxu0 %v239_v13 }
 0x244   :  { %v537_v16 = vpop.f32.mrb[0].mxu0 }
 0x245   :  { %v538_v18 = vpop.f32.mrb[1].mxu0 }
 0x246   :  { %v539_v19 = vadd.f32 %v538_v18, %v537_v16  ;;  %v540_v20 = vpop.f32.mrb[2].mxu0 }
 0x247   :  { %v541_v21 = vpop.f32.mrb[3].mxu0 }
 0x248   :  { %v411_v22 = vadd.f32 %v539_v19, %v500_v17 }
 0x24a   :  { %v416_v24 = vmax.f32 %v411_v22, 0.0 }
 0x24c   :  { %v417_v25 = vpack.c.bf16 %v416_v24, %v416_v24 }
 0x24e   :  { %551 = vmatmul.mubr.msk.bf16.vlgmr.msra.gmra.mrb[8].mxu1 %vm441_vm12, %v417_v25 }
 0x321   :  { %v479_v27 = vpop.f32.mrb[8].mxu1 }
 0x322   :  { %v480_v23 = vadd.f32 %v517_v26, %v479_v27  ;;  %v552_v28 = vpop.f32.mrb[9].mxu1 }
 0x323   :  { %v482_v29 = vpop.f32.mrb[10].mxu1 }
 0x324   :  { %486 = vst.msk [vmem:[%s765_s8] sm:$0xff] %vm485_vm13, %v480_v23  ;;  %v553_v30 = vpop.f32.mrb[11].mxu1 }

</bundles_post_ra>
